<compile_context>
chip_gen: v7x
topology: tpu7x:2x2x1
jax: 0.10.0
libtpu: 0.0.40
codegen_flags: <defaults>
</compile_context>

<pallas_src>
import jax
import jax.numpy as jnp
from jax.experimental import pallas as pl
from jax.experimental.pallas import tpu as pltpu

HIDDEN = 12      # GCN hidden width from the module spec
LANES = 128
SUBLANES = 8


def _round_up(v, m):
    return (v + m - 1) // m * m


def _slab_offsets(in_channels, hidden=HIDDEN):
    """Row offsets of each weight/bias section, aligned to 8 sublanes."""
    o_w1 = 0
    o_b1 = _round_up(o_w1 + in_channels, SUBLANES)
    o_w2 = _round_up(o_b1 + 1, SUBLANES)
    o_b2 = _round_up(o_w2 + hidden, SUBLANES)
    o_wo = _round_up(o_b2 + 1, SUBLANES)
    o_bo = _round_up(o_wo + hidden, SUBLANES)
    rows = _round_up(o_bo + 1, SUBLANES)
    return o_w1, o_b1, o_w2, o_b2, o_wo, o_bo, rows


# ----------------------------------------------------------------------------
# Kernel builder (static tile size / tile count / slab offsets baked in).
# ----------------------------------------------------------------------------
def make_gnn_kernel(in_channels, hidden, tile, num_tiles):
    c = in_channels
    o_w1, o_b1, o_w2, o_b2, o_wo, o_bo, _ = _slab_offsets(c, hidden)
    f32 = jnp.float32
    bf16 = jnp.bfloat16

    def leaky(v):                      # nn.LeakyReLU default negative_slope
        return jnp.where(v > 0, v, 0.01 * v)

    def finalize(adj_all, h1_all, pool, slab_ref, out_ref):
        # layer 2: GCNConv(12,12) + LeakyReLU, then pooling + output Linear.
        w2 = slab_ref[o_w2:o_w2 + hidden, 0:hidden]
        b2 = slab_ref[o_b2:o_b2 + 1, 0:hidden]
        wo = slab_ref[o_wo:o_wo + hidden, :]          # [12,128] zero-padded
        bo = slab_ref[o_bo:o_bo + 1, :]                # bias + folded attn col
        s = jnp.dot(adj_all, h1_all, preferred_element_type=f32)   # [Np,12]
        h2 = leaky(jnp.dot(s, w2, preferred_element_type=f32) + b2)
        # global_add_pool as a one-hot matmul (pool is bf16 0/1; f32 acc).
        xgcn = jnp.dot(pool, h2.astype(bf16), preferred_element_type=f32)
        # output Linear(13,out); softmax of the [G,1] attention column == 1,
        # so its contribution (Wout[0]) is pre-folded into `bo` (exact, eval).
        out_ref[...] = jnp.dot(xgcn, wo, preferred_element_type=f32) + bo

    if num_tiles > 1:
        # Streaming path: adj row tiles arrive via the BlockSpec pipeline,
        # layer-1 runs per tile while the next tile's DMA is in flight.
        def kernel(adj_ref, x_ref, pool_ref, slab_ref, out_ref,
                   adj_vmem, h1_vmem, xw_vmem):
            i = pl.program_id(0)

            @pl.when(i == 0)
            def _():
                # x @ W1 computed once per call (tiny [Np,12]); w1 cast once.
                w1 = slab_ref[o_w1:o_w1 + c, 0:hidden].astype(bf16)
                xw = jnp.dot(x_ref[...], w1, preferred_element_type=f32)
                xw_vmem[...] = xw.astype(bf16)

            adj_tile = adj_ref[...]                       # [tile, Np] bf16
            row0 = pl.multiple_of(i * tile, tile)
            # keep the streamed adjacency resident so layer 2 never re-reads HBM
            adj_vmem[pl.ds(row0, tile), :] = adj_tile

            b1 = slab_ref[o_b1:o_b1 + 1, 0:hidden]
            h1 = jnp.dot(adj_tile, xw_vmem[...],
                         preferred_element_type=f32) + b1
            h1_vmem[pl.ds(row0, tile), :] = leaky(h1).astype(bf16)

            @pl.when(i == num_tiles - 1)
            def _():
                finalize(adj_vmem[...], h1_vmem[...], pool_ref[...],
                         slab_ref, out_ref)
    else:
        # Single-tile fast path (small graphs): no scratch, no copies.
        def kernel(adj_ref, x_ref, pool_ref, slab_ref, out_ref):
            w1 = slab_ref[o_w1:o_w1 + c, 0:hidden].astype(bf16)
            b1 = slab_ref[o_b1:o_b1 + 1, 0:hidden]
            adj = adj_ref[...]
            xw = jnp.dot(x_ref[...], w1, preferred_element_type=f32)
            h1 = leaky(jnp.dot(adj, xw.astype(bf16),
                               preferred_element_type=f32) + b1)
            finalize(adj, h1.astype(bf16), pool_ref[...], slab_ref, out_ref)

    return kernel


# ----------------------------------------------------------------------------
# Plain-JAX glue: graph preprocessing, parameter packing, pallas_call wrapper.
# ----------------------------------------------------------------------------
def build_norm_adj_padded_bf16(edge_index, num_nodes, n_pad):
    """D^{-1/2}(A+I)D^{-1/2}, built directly at padded size and cast to bf16."""
    src, dst = edge_index
    a = jnp.zeros((n_pad, n_pad), jnp.float32)
    a = a.at[dst, src].add(1.0)                         # message src -> dst
    self_loop = (jnp.arange(n_pad) < num_nodes).astype(jnp.float32)
    a = a + jnp.diag(self_loop)                         # self loops, real nodes
    deg = jnp.sum(a, axis=1)
    dinv = jax.lax.rsqrt(jnp.maximum(deg, 1e-12))
    return (dinv[:, None] * a * dinv[None, :]).astype(jnp.bfloat16)


def build_pool_matrix_bf16(batch, num_nodes, num_graphs, n_pad, g_pad):
    """One-hot pooling operator; padded nodes map to no graph (column of 0)."""
    b = jnp.full((n_pad,), -1, jnp.int32).at[:num_nodes].set(
        batch.astype(jnp.int32))
    gids = jnp.arange(g_pad, dtype=jnp.int32)
    return (b[None, :] == gids[:, None]).astype(jnp.bfloat16)


def init_params(key, in_channels, out_channels):
    ks = jax.random.split(key, 12)
    s = 0.1
    return {
        "w1": jax.random.normal(ks[0], (in_channels, 12), jnp.float32) * s,
        "b1": jax.random.normal(ks[1], (1, 12), jnp.float32) * s,
        "w2": jax.random.normal(ks[2], (12, 12), jnp.float32) * s,
        "b2": jax.random.normal(ks[3], (1, 12), jnp.float32) * s,
        # attention head params (cannot affect eval output: softmax of a
        # single column == 1); kept for spec fidelity / reference check.
        "wa": jax.random.normal(ks[4], (12, 4), jnp.float32) * s,
        "ba": jax.random.normal(ks[5], (1, 4), jnp.float32) * s,
        "wb": jax.random.normal(ks[6], (12, 4), jnp.float32) * s,
        "bb": jax.random.normal(ks[7], (1, 4), jnp.float32) * s,
        "wc": jax.random.normal(ks[8], (4, 1), jnp.float32) * s,
        "bc": jax.random.normal(ks[9], (1, 1), jnp.float32) * s,
        "wo": jax.random.normal(ks[10], (13, out_channels), jnp.float32) * s,
        "bo": jax.random.normal(ks[11], (1, out_channels), jnp.float32) * s,
    }


def pack_weight_slab(params, in_channels, out_channels, hidden=HIDDEN):
    """Pack every kernel-resident weight/bias into one [rows,128] f32 slab."""
    o_w1, o_b1, o_w2, o_b2, o_wo, o_bo, rows = _slab_offsets(in_channels, hidden)
    slab = jnp.zeros((rows, LANES), jnp.float32)
    slab = slab.at[o_w1:o_w1 + in_channels, 0:hidden].set(params["w1"])
    slab = slab.at[o_b1:o_b1 + 1, 0:hidden].set(params["b1"])
    slab = slab.at[o_w2:o_w2 + hidden, 0:hidden].set(params["w2"])
    slab = slab.at[o_b2:o_b2 + 1, 0:hidden].set(params["b2"])
    # fold degenerate attention column (always 1.0) into the bias: exact.
    slab = slab.at[o_wo:o_wo + hidden, 0:out_channels].set(params["wo"][1:, :])
    slab = slab.at[o_bo:o_bo + 1, 0:out_channels].set(
        params["bo"] + params["wo"][:1, :])
    return slab


def _vmem_limit_bytes(n_pad, c, g_pad, tile, num_tiles, slab_rows):
    lane = lambda v: _round_up(max(v, 1), LANES)
    bf, f = 2, 4
    budget = 0
    budget += 2 * tile * lane(n_pad) * bf            # adj tiles, double-buffered
    budget += n_pad * lane(c) * bf                    # x (resident)
    budget += g_pad * lane(n_pad) * bf                # pool (resident)
    budget += slab_rows * LANES * f                   # weight slab
    budget += 2 * g_pad * LANES * f                   # output block
    if num_tiles > 1:
        budget += n_pad * lane(n_pad) * bf            # persistent adj copy
        budget += 2 * n_pad * lane(HIDDEN) * bf       # h1 + xw scratch
    budget = int(budget * 1.25) + (2 << 20)           # headroom + compiler tmp
    try:
        phys = pltpu.get_tpu_info().vmem_capacity_bytes
    except Exception:
        phys = 64 << 20                                # v7x floor, safe anywhere
    return max(16 << 20, min(budget, int(phys * 0.9)))


def gnn_forward(x, edge_index, batch, params, num_graphs, out_channels,
                tile_rows=512):
    num_nodes, in_channels = x.shape
    tile = min(_round_up(tile_rows, SUBLANES), _round_up(num_nodes, SUBLANES))
    n_pad = _round_up(num_nodes, tile)
    num_tiles = n_pad // tile
    g_pad = _round_up(num_graphs, SUBLANES)

    adj = build_norm_adj_padded_bf16(edge_index, num_nodes, n_pad)
    pool = build_pool_matrix_bf16(batch, num_nodes, num_graphs, n_pad, g_pad)
    x_p = jnp.pad(x, ((0, n_pad - num_nodes), (0, 0))).astype(jnp.bfloat16)

    slab = pack_weight_slab(params, in_channels, out_channels)
    slab_rows = slab.shape[0]
    kernel = make_gnn_kernel(in_channels, HIDDEN, tile, num_tiles)

    scratch = []
    if num_tiles > 1:
        scratch = [pltpu.VMEM((n_pad, n_pad), jnp.bfloat16),   # resident adj
                   pltpu.VMEM((n_pad, HIDDEN), jnp.bfloat16),  # layer-1 acts
                   pltpu.VMEM((n_pad, HIDDEN), jnp.bfloat16)]  # x @ W1

    flops = (2 * n_pad * in_channels * HIDDEN
             + 4 * n_pad * n_pad * HIDDEN               # two propagation hops
             + 2 * n_pad * HIDDEN * HIDDEN
             + 2 * g_pad * n_pad * HIDDEN
             + 2 * g_pad * HIDDEN * LANES)
    bytes_accessed = (adj.size * 2 + x_p.size * 2 + pool.size * 2
                      + slab.size * 4 + g_pad * LANES * 4)

    grid_spec = pltpu.PrefetchScalarGridSpec(
        num_scalar_prefetch=0,
        grid=(num_tiles,),
        in_specs=[
            pl.BlockSpec((tile, n_pad), lambda i: (i, 0)),       # adj row tiles
            pl.BlockSpec((n_pad, in_channels), lambda i: (0, 0)),  # x resident
            pl.BlockSpec((g_pad, n_pad), lambda i: (0, 0)),      # pool resident
            pl.BlockSpec((slab_rows, LANES), lambda i: (0, 0)),  # weight slab
        ],
        out_specs=pl.BlockSpec((g_pad, LANES), lambda i: (0, 0)),
        scratch_shapes=scratch,
    )

    out_pad = pl.pallas_call(
        kernel,
        out_shape=jax.ShapeDtypeStruct((g_pad, LANES), jnp.float32),
        grid_spec=grid_spec,
        compiler_params=pltpu.CompilerParams(
            # sequential: persistent scratch carries state across tiles
            dimension_semantics=("arbitrary",),
            vmem_limit_bytes=_vmem_limit_bytes(
                n_pad, in_channels, g_pad, tile, num_tiles, slab_rows)),
        cost_estimate=pl.CostEstimate(flops=flops, transcendentals=0,
                                      bytes_accessed=bytes_accessed),
    )(adj, x_p, pool, slab)

    return out_pad[:num_graphs, :out_channels]


# ----------------------------------------------------------------------------
# Pure-JAX f32 reference (full attention head, no folds) for validation.
# ----------------------------------------------------------------------------
def gnn_reference(x, edge_index, batch, params, num_graphs):
    n = x.shape[0]
    src, dst = edge_index
    a = jnp.zeros((n, n), jnp.float32).at[dst, src].add(1.0) + jnp.eye(n)
    deg = a.sum(axis=1)
    dinv = jax.lax.rsqrt(jnp.maximum(deg, 1e-12))
    adj = dinv[:, None] * a * dinv[None, :]
    leaky = lambda v: jnp.where(v > 0, v, 0.01 * v)
    h = leaky(adj @ (x @ params["w1"]) + params["b1"])
    h = leaky(adj @ (h @ params["w2"]) + params["b2"])
    pool = (batch[None, :] == jnp.arange(num_graphs)[:, None]).astype(jnp.float32)
    xgcn = pool @ h
    aa = jnp.tanh(xgcn @ params["wa"] + params["ba"])      # Dropout = identity (eval)
    bb = jax.nn.sigmoid(xgcn @ params["wb"] + params["bb"])
    att = jax.nn.softmax((aa * bb) @ params["wc"] + params["bc"], axis=1)
    return jnp.hstack([att, xgcn]) @ params["wo"] + params["bo"]


def make_example(key, num_graphs, nodes_per_graph, in_channels):
    num_nodes = num_graphs * nodes_per_graph
    x = jax.random.normal(key, (num_nodes, in_channels), jnp.float32)
    src_list, dst_list = [], []
    for g in range(num_graphs):                     # undirected ring per graph
        base = g * nodes_per_graph
        for i in range(nodes_per_graph):
            u = base + i
            v = base + (i + 1) % nodes_per_graph
            src_list += [u, v]
            dst_list += [v, u]
    edge_index = jnp.array([src_list, dst_list], dtype=jnp.int32)
    batch = jnp.repeat(jnp.arange(num_graphs, dtype=jnp.int32), nodes_per_graph)
    return x, edge_index, batch


if __name__ == "__main__":
    key = jax.random.PRNGKey(0)
    configs = [
        # small: single-tile fast path
        dict(in_channels=8, out_channels=3, num_graphs=2,
             nodes_per_graph=8, tile_rows=512),
        # larger: exercises the streaming multi-tile path (3 adj row tiles)
        dict(in_channels=16, out_channels=5, num_graphs=6,
             nodes_per_graph=50, tile_rows=128),
    ]
    for cfg in configs:
        key, kx, kp = jax.random.split(key, 3)
        x, edge_index, batch = make_example(
            kx, cfg["num_graphs"], cfg["nodes_per_graph"], cfg["in_channels"])
        params = init_params(kp, cfg["in_channels"], cfg["out_channels"])

        out = gnn_forward(x, edge_index, batch, params,
                          cfg["num_graphs"], cfg["out_channels"],
                          tile_rows=cfg["tile_rows"])
        out = jax.block_until_ready(out)
        ref = gnn_reference(x, edge_index, batch, params, cfg["num_graphs"])

        assert out.shape == (cfg["num_graphs"], cfg["out_channels"])
        assert bool(jnp.all(jnp.isfinite(out)))
        # lenient tolerance: adjacency / features are bf16 in the kernel
        assert bool(jnp.allclose(out, ref, rtol=5e-2, atol=5e-2))

    print("KERNEL_OK")
</pallas_src>

<mosaic_0001>
module attributes {stable_mosaic.version = 11 : i64} {
  func.func @kernel(%arg0: i32, %arg1: memref<16x16xbf16, #tpu.memory_space<vmem>>, %arg2: memref<16x8xbf16, #tpu.memory_space<vmem>>, %arg3: memref<8x16xbf16, #tpu.memory_space<vmem>>, %arg4: memref<64x128xf32, #tpu.memory_space<vmem>>, %arg5: memref<8x128xf32, #tpu.memory_space<vmem>>) attributes {dimension_semantics = [#tpu.dimension_semantics<arbitrary>], iteration_bounds = array<i64: 1>, scalar_prefetch = 0 : i64, scratch_operands = 0 : i64, tpu.core_type = #tpu.core_type<tc>, window_params = [{transform_indices = @transform_0, window_bounds = array<i64: 16, 16>}, {pipeline_mode = #tpu.pipeline_mode<synchronous>, transform_indices = @transform_1, window_bounds = array<i64: 16, 8>}, {pipeline_mode = #tpu.pipeline_mode<synchronous>, transform_indices = @transform_2, window_bounds = array<i64: 8, 16>}, {pipeline_mode = #tpu.pipeline_mode<synchronous>, transform_indices = @transform_3, window_bounds = array<i64: 64, 128>}, {pipeline_mode = #tpu.pipeline_mode<synchronous>, transform_indices = @transform_4, window_bounds = array<i64: 8, 128>}]} {
    %c0 = arith.constant 0 : index
    %c0_0 = arith.constant 0 : index
    %0 = vector.load %arg4[%c0, %c0_0] : memref<64x128xf32, #tpu.memory_space<vmem>>, vector<8x12xf32>
    %1 = arith.truncf %0 : vector<8x12xf32> to vector<8x12xbf16>
    %c8 = arith.constant 8 : index
    %c0_1 = arith.constant 0 : index
    %2 = vector.load %arg4[%c8, %c0_1] : memref<64x128xf32, #tpu.memory_space<vmem>>, vector<1x12xf32>
    %c0_2 = arith.constant 0 : index
    %c0_3 = arith.constant 0 : index
    %3 = vector.load %arg1[%c0_2, %c0_3] : memref<16x16xbf16, #tpu.memory_space<vmem>>, vector<16x16xbf16>
    %c0_4 = arith.constant 0 : index
    %c0_5 = arith.constant 0 : index
    %4 = vector.load %arg2[%c0_4, %c0_5] : memref<16x8xbf16, #tpu.memory_space<vmem>>, vector<16x8xbf16>
    %cst = arith.constant dense<0.000000e+00> : vector<16x12xf32>
    %5 = tpu.matmul %4, %1, %cst {dimension_numbers = #tpu.dot_dimension_numbers<[1], [0], [0], [1], [0, 0, 1, 1], [], []>} : vector<16x8xbf16>, vector<8x12xbf16>, vector<16x12xf32> -> vector<16x12xf32>
    %6 = arith.truncf %5 : vector<16x12xf32> to vector<16x12xbf16>
    %cst_6 = arith.constant dense<0.000000e+00> : vector<16x12xf32>
    %7 = tpu.matmul %3, %6, %cst_6 {dimension_numbers = #tpu.dot_dimension_numbers<[1], [0], [0], [1], [0, 0, 1, 1], [], []>} : vector<16x16xbf16>, vector<16x12xbf16>, vector<16x12xf32> -> vector<16x12xf32>
    %8 = vector.broadcast %2 : vector<1x12xf32> to vector<16x12xf32>
    %9 = arith.addf %7, %8 : vector<16x12xf32>
    %cst_7 = arith.constant 0.000000e+00 : f32
    %10 = vector.broadcast %cst_7 : f32 to vector<16x12xf32>
    %11 = arith.cmpf ogt, %9, %10 : vector<16x12xf32>
    %cst_8 = arith.constant 0.00999999977 : f32
    %12 = vector.broadcast %cst_8 : f32 to vector<16x12xf32>
    %13 = arith.mulf %12, %9 : vector<16x12xf32>
    %14 = arith.select %11, %9, %13 : vector<16x12xi1>, vector<16x12xf32>
    %15 = arith.truncf %14 : vector<16x12xf32> to vector<16x12xbf16>
    %c0_9 = arith.constant 0 : index
    %c0_10 = arith.constant 0 : index
    %16 = vector.load %arg3[%c0_9, %c0_10] : memref<8x16xbf16, #tpu.memory_space<vmem>>, vector<8x16xbf16>
    %c16 = arith.constant 16 : index
    %c0_11 = arith.constant 0 : index
    %17 = vector.load %arg4[%c16, %c0_11] : memref<64x128xf32, #tpu.memory_space<vmem>>, vector<12x12xf32>
    %c32 = arith.constant 32 : index
    %c0_12 = arith.constant 0 : index
    %18 = vector.load %arg4[%c32, %c0_12] : memref<64x128xf32, #tpu.memory_space<vmem>>, vector<1x12xf32>
    %c40 = arith.constant 40 : index
    %c0_13 = arith.constant 0 : index
    %19 = vector.load %arg4[%c40, %c0_13] : memref<64x128xf32, #tpu.memory_space<vmem>>, vector<12x128xf32>
    %c56 = arith.constant 56 : index
    %c0_14 = arith.constant 0 : index
    %20 = vector.load %arg4[%c56, %c0_14] : memref<64x128xf32, #tpu.memory_space<vmem>>, vector<1x128xf32>
    %cst_15 = arith.constant dense<0.000000e+00> : vector<16x12xf32>
    %21 = tpu.matmul %3, %15, %cst_15 {dimension_numbers = #tpu.dot_dimension_numbers<[1], [0], [0], [1], [0, 0, 1, 1], [], []>} : vector<16x16xbf16>, vector<16x12xbf16>, vector<16x12xf32> -> vector<16x12xf32>
    %cst_16 = arith.constant dense<0.000000e+00> : vector<16x12xf32>
    %22 = tpu.matmul %21, %17, %cst_16 {dimension_numbers = #tpu.dot_dimension_numbers<[1], [0], [0], [1], [0, 0, 1, 1], [], []>} : vector<16x12xf32>, vector<12x12xf32>, vector<16x12xf32> -> vector<16x12xf32>
    %23 = vector.broadcast %18 : vector<1x12xf32> to vector<16x12xf32>
    %24 = arith.addf %22, %23 : vector<16x12xf32>
    %cst_17 = arith.constant 0.000000e+00 : f32
    %25 = vector.broadcast %cst_17 : f32 to vector<16x12xf32>
    %26 = arith.cmpf ogt, %24, %25 : vector<16x12xf32>
    %cst_18 = arith.constant 0.00999999977 : f32
    %27 = vector.broadcast %cst_18 : f32 to vector<16x12xf32>
    %28 = arith.mulf %27, %24 : vector<16x12xf32>
    %29 = arith.select %26, %24, %28 : vector<16x12xi1>, vector<16x12xf32>
    %30 = arith.truncf %29 : vector<16x12xf32> to vector<16x12xbf16>
    %cst_19 = arith.constant dense<0.000000e+00> : vector<8x12xf32>
    %31 = tpu.matmul %16, %30, %cst_19 {dimension_numbers = #tpu.dot_dimension_numbers<[1], [0], [0], [1], [0, 0, 1, 1], [], []>} : vector<8x16xbf16>, vector<16x12xbf16>, vector<8x12xf32> -> vector<8x12xf32>
    %cst_20 = arith.constant dense<0.000000e+00> : vector<8x128xf32>
    %32 = tpu.matmul %31, %19, %cst_20 {dimension_numbers = #tpu.dot_dimension_numbers<[1], [0], [0], [1], [0, 0, 1, 1], [], []>} : vector<8x12xf32>, vector<12x128xf32>, vector<8x128xf32> -> vector<8x128xf32>
    %33 = vector.broadcast %20 : vector<1x128xf32> to vector<8x128xf32>
    %34 = arith.addf %32, %33 : vector<8x128xf32>
    %c0_21 = arith.constant 0 : index
    %c0_22 = arith.constant 0 : index
    %35 = vector.load %arg5[%c0_21, %c0_22] : memref<8x128xf32, #tpu.memory_space<vmem>>, vector<8x128xf32>
    tpu.vector_store %arg5[%c0_21, %c0_22], %34 {strides = array<i32>} : memref<8x128xf32, #tpu.memory_space<vmem>>, vector<8x128xf32>,
    return
  }
  func.func @transform_0(%arg0: i32) -> (i32, i32) {
    %c0_i32 = arith.constant 0 : i32
    %c0_i32_0 = arith.constant 0 : i32
    return %arg0, %c0_i32 : i32, i32
  }
  func.func @transform_1(%arg0: i32) -> (i32, i32) {
    %c0_i32 = arith.constant 0 : i32
    %c0_i32_0 = arith.constant 0 : i32
    %c0_i32_1 = arith.constant 0 : i32
    return %c0_i32, %c0_i32_0 : i32, i32
  }
  func.func @transform_2(%arg0: i32) -> (i32, i32) {
    %c0_i32 = arith.constant 0 : i32
    %c0_i32_0 = arith.constant 0 : i32
    %c0_i32_1 = arith.constant 0 : i32
    return %c0_i32, %c0_i32_0 : i32, i32
  }
  func.func @transform_3(%arg0: i32) -> (i32, i32) {
    %c0_i32 = arith.constant 0 : i32
    %c0_i32_0 = arith.constant 0 : i32
    %c0_i32_1 = arith.constant 0 : i32
    return %c0_i32, %c0_i32_0 : i32, i32
  }
  func.func @transform_4(%arg0: i32) -> (i32, i32) {
    %c0_i32 = arith.constant 0 : i32
    %c0_i32_0 = arith.constant 0 : i32
    %c0_i32_1 = arith.constant 0 : i32
    return %c0_i32, %c0_i32_0 : i32, i32
  }
}

</mosaic_0001>

<bundles_post_ra>
// kernel: tpu_custom_call.1
= control target key start
LH: loop header
LB: loop body
LE: loop exit
PB: predicated region body
PF: predicated region fallthrough
CT: control target
= control target key end

     0   :  { %9 = vsyncpa [#allocation3], 0  ;;  %s663_s0 = inlined_call_operand.vmem [shape: bf16[16,16], index: 0, kind: input, shape index: {}]   ;;  %s664_s1 = inlined_call_operand.vmem [shape: bf16[16,8], index: 1, kind: input, shape index: {}]   ;;  %s665_s2 = inlined_call_operand.vmem [shape: bf16[8,16], index: 2, kind: input, shape index: {}]   ;;  %s666_s3 = inlined_call_operand.hbm [shape: f32[64,128], index: 3, kind: input, shape index: {}]   ;;  %s667_s4 = inlined_call_operand.hbm [shape: f32[8,128], index: 4, kind: output, shape index: {}]  }
   0x1   :  { %10 = vsyncpa [#allocation4], 0  ;;  %s574_s15 = smov [#allocation2]   ;;  %s526_s19 = scalar_lea.hbm %s666_s3, 1024 }
   0x2   :  { %s22_s16 = sshll.u32 %s574_s15, 4  ;;  %p527_p0 = scmp.ne.s32.totalorder %s666_s3, %s526_s19  ;;  %s23_s16 = int_to_ptr.vmem [resolvable:$true] %s22_s16 }
   0x3   :  { %p530_p1 = scmp.lt.u32.totalorder %s526_s19, %s666_s3 }
   0x5   :  { %p532_p2 = pnand %p530_p1, %p527_p0 }
   0x7   :  { %535 = shalt.err (!%p532_p2)
}
   0x8   :  { %s536_s24 = scalar_lea.vmem %s23_s16, 1024  ;;  %p541_p4 = scmp.lt.s32.totalorder %s23_s16, %s23_s16 }
   0x9   :  { %p537_p3 = scmp.ne.s32.totalorder %s23_s16, %s536_s24  ;;  %p542_p5 = scmp.lt.s32.totalorder %s536_s24, %s536_s24 }
   0xb   :  { %p543_p6 = por %p542_p5, %p541_p4 }
   0xd   :  { %p544_p7 = pnand %p543_p6, %p537_p3 }
   0xf   :  { %547 = shalt.err (!%p544_p7)
}
  0x10   :  { %s575_s25 = smov 128   ;;  %s576_s26 = smov 8  }
  0x11   :  { %28 = dma.hbm_to_vmem [thread:$0]  %s666_s3, 1024, %s23_s16, [#allocation3], %s575_s25, %s575_s25, %s576_s26  }
  0x12   :  { %570 = dma.done.wait [#allocation3], 1024  }
  0x13   :  { %571 = vsyncadd [#allocation3], 4294966272  ;;  %v577_v0 = vmov 0.0   ;;  %vm578_vm0 = vmmov 0   ;;  %v33_v1 = vld [vmem:[#allocation2] sm:$0xff]  ;;  %vm49_vm1 = vcmask 1043456  }
  0x14   :  { %468 = vmatprep.subr.bf16.mxu0 %v577_v0  ;;  %470 = vmatprep.mubr.msk.bf16.mxu0 %vm578_vm0, %v577_v0  ;;  %v34_v2 = vpack.c.bf16 %v33_v1, %v33_v1  ;;  %v524_v4 = vld [vmem:[%s664_s1] sm:$0xff]   ;;  %vm45_vm2 = vcmask 64512   ;;  %vm104_vm3 = vcmask 130048   ;;  %vm579_vm4 = vmmov 1   ;;  %v157_v12 = vld [vmem:[#allocation2 + $0x10] sm:$0xff]  ;;  %v160_v31 = vld [vmem:[#allocation2 + $0x28] sm:$0xff] }
  0x15   :  { %474 = vmatprep.subr.bf16.mxu1 %v577_v0  ;;  %476 = vmatprep.mubr.msk.bf16.mxu1 %vm578_vm0, %v577_v0  ;;  %v525_v10 = vld [vmem:[%s663_s0] sm:$0xff]   ;;  %vm631_vm5 = vmpackc.low %vm49_vm1, %vm579_vm4  ;;  %v158_v13 = vld [vmem:[#allocation2 + $0x18] sm:$0xf]  ;;  %vm208_vm8 = vcmask 97280   ;;  %v580_v33 = vmov 0.0|0.0   ;;  %s581_s6 = smov [#allocation5]  }
  0x16   :  { %v51_v3 = vsel %vm49_vm1, %v34_v2, 0  ;;  %v506_v14 = vpack.c.bf16 %v158_v13, %v157_v12  ;;  %v441_v15 = vld [vmem:[#allocation2 + $0x8] ss:$0 sm:$0xff]  ;;  %v161_v32 = vld [vmem:[#allocation2 + $0x30] sm:$0xf]  ;;  %s430_s7 = sshll.u32 %s581_s6, 4  ;;  %s431_s7 = int_to_ptr.vmem [resolvable:$true] %s430_s7 }
  0x17   :  { %469 = vmatpush3.bf16.msra.mxu0 %v51_v3  ;;  %v513_v34 = vpack.c.bf16 %v161_v32, %v160_v31  ;;  %v445_v35 = vld [vmem:[#allocation2 + $0x20] ss:$0 sm:$0xff]  ;;  %v450_v50 = vld [vmem:[#allocation2 + $0x38] ss:$0 sm:$0xff]  ;;  %s548_s8 = scalar_lea.vmem %s431_s7, 128  ;;  %p553_p9 = scmp.lt.s32.totalorder %s431_s7, %s431_s7 }
  0x18   :  { %480 = vmatprep.subr.bf16.mxu0 %v577_v0  ;;  %v156_v45 = vld [vmem:[%s665_s2] sm:$0xf]  ;;  %p549_p8 = scmp.ne.s32.totalorder %s431_s7, %s548_s8  ;;  %p554_p10 = scmp.lt.s32.totalorder %s548_s8, %s548_s8 }
  0x1a   :  { %471 = vmatmul.mubr.msk.bf16.vlgmr.msra.gmra.mrb[0].mxu0 %vm45_vm2, %v524_v4  ;;  %p555_p11 = por %p554_p10, %p553_p9 }
  0x1b   :  { %482 = vmatprep.mubr.msk.bf16.mxu0 %vm578_vm0, %v577_v0 }
  0x1c   :  { %p556_p12 = pnand %p555_p11, %p549_p8 }
  0xed   :  { %v87_v5 = vpop.f32.mrb[0].mxu0 }
  0xee   :  { %v472_v6 = vpop.f32.mrb[1].mxu0 }
  0xef   :  { %v90_v7 = vpop.f32.mrb[2].mxu0 }
  0xf0   :  { %v94_v8 = vpack.c.bf16 %v90_v7, %v87_v5  ;;  %v473_v9 = vpop.f32.mrb[3].mxu0 }
  0xf2   :  { %475 = vmatpush3.bf16.msra.mxu1 %v94_v8 }
  0xf3   :  { %508 = vmatprep.subr.msk.bf16.mxu1 %vm631_vm5, %v506_v14 }
  0xf5   :  { %477 = vmatmul.mubr.msk.bf16.vlgmr.msra.gmra.mrb[0].mxu1 %vm104_vm3, %v525_v10 }
  0xf6   :  { %511 = vmatpush3.bf16.msk.msra.mxu1 %vm631_vm5, %v506_v14 }
  0xf7   :  { %493 = vmatprep.subr.bf16.mxu1 %v577_v0 }
 0x1c8   :  { %v142_v16 = vpop.f32.mrb[0].mxu1 }
 0x1c9   :  { %v143_v17 = vadd.f32 %v441_v15, %v142_v16  ;;  %v478_v18 = vpop.f32.mrb[1].mxu1 }
 0x1ca   :  { %v145_v19 = vpop.f32.mrb[2].mxu1 }
 0x1cb   :  { %v151_v20 = vmul.f32 0.01, %v143_v17  ;;  %v146_v21 = vadd.f32 %v441_v15, %v145_v19  ;;  %v479_v22 = vpop.f32.mrb[3].mxu1  ;;  %vm149_vm6 = vcmp.gt.f32.partialorder %v143_v17, 0.0 }
 0x1cd   :  { %vm150_vm7 = vcmp.gt.f32.partialorder %v146_v21, 0.0  ;;  %v152_v23 = vmul.f32 0.01, %v146_v21  ;;  %v153_v24 = vsel %vm149_vm6, %v143_v17, %v151_v20 }
 0x1cf   :  { %v154_v25 = vsel %vm150_vm7, %v146_v21, %v152_v23 }
 0x1d0   :  { %v155_v26 = vpack.c.bf16 %v154_v25, %v153_v24 }
 0x1d2   :  { %481 = vmatpush3.bf16.msra.mxu0 %v155_v26 }
 0x1d3   :  { %512 = vmatprep.subr.bf16.mxu0 %v580_v33 }
 0x1d5   :  { %483 = vmatmul.mubr.msk.bf16.vlgmr.msra.gmra.mrb[4].mxu0 %vm104_vm3, %v525_v10 }
 0x1d6   :  { %503 = vmatprep.mubr.msk.f32.mxu0 %vm578_vm0, %v577_v0  ;;  %515 = vmatpush3.bf16.msk.msra.mxu0 %vm631_vm5, %v513_v34 }
 0x2a8   :  { %v197_v27 = vpop.f32.mrb[4].mxu0 }
 0x2a9   :  { %v484_v28 = vpop.f32.mrb[5].mxu0  ;;  %490 = vmatprep.mubr.msk.f32.mxu1 %vm208_vm8, %v197_v27 }
 0x2aa   :  { %v200_v29 = vpop.f32.mrb[6].mxu0 }
 0x2ab   :  { %491 = vmatmul.mubr.msk.f32.vlgmr.msra.gmra.mrb[4].mxu1 %vm208_vm8, %v200_v29  ;;  %v485_v30 = vpop.f32.mrb[7].mxu0 }
 0x2ac   :  { %495 = vmatprep.mubr.msk.bf16.mxu1 %vm578_vm0, %v577_v0 }
 0x37e   :  { %v492_v36 = vpop.f32.mrb[4].mxu1 }
 0x37f   :  { %v290_v37 = vadd.f32 %v492_v36, %v445_v35  ;;  %v284_v38 = vpop.f32.mrb[5].mxu1 }
 0x380   :  { %v285_v39 = vadd.f32 %v445_v35, %v284_v38 }
 0x381   :  { %vm294_vm9 = vcmp.gt.f32.partialorder %v290_v37, 0.0  ;;  %v296_v40 = vmul.f32 0.01, %v290_v37 }
 0x382   :  { %vm293_vm10 = vcmp.gt.f32.partialorder %v285_v39, 0.0  ;;  %v295_v41 = vmul.f32 0.01, %v285_v39 }
 0x383   :  { %v298_v42 = vsel %vm294_vm9, %v290_v37, %v296_v40 }
 0x384   :  { %v297_v43 = vsel %vm293_vm10, %v285_v39, %v295_v41 }
 0x385   :  { %v299_v44 = vpack.c.bf16 %v298_v42, %v297_v43 }
 0x387   :  { %494 = vmatpush3.bf16.msra.mxu1 %v299_v44 }
 0x38a   :  { %496 = vmatmul.mubr.msk.bf16.vlgmr.msra.gmra.mrb[8].mxu1 %vm104_vm3, %v156_v45 }
 0x45d   :  { %v337_v46 = vpop.f32.mrb[8].mxu1 }
 0x45e   :  { %v497_v47 = vpop.f32.mrb[9].mxu1  ;;  %504 = vmatmul.mubr.msk.f32.vlgmr.msra.gmra.mrb[8].mxu0 %vm208_vm8, %v337_v46 }
 0x45f   :  { %v340_v48 = vpop.f32.mrb[10].mxu1 }
 0x460   :  { %v498_v49 = vpop.f32.mrb[11].mxu1 }
 0x531   :  { %v419_v51 = vpop.f32.mrb[8].mxu0 }
 0x532   :  { %v420_v52 = vadd.f32 %v450_v50, %v419_v51  ;;  %v505_v53 = vpop.f32.mrb[9].mxu0 }
 0x534   :  { %423 = vst [vmem:[#allocation5] sm:$0xff] %v420_v52 }
 0x535   :  { %559 = shalt.err (!%p556_p12)
}
 0x536   :  { %s560_s10 = scalar_lea.hbm %s667_s4, 128 }
 0x537   :  { %p561_p13 = scmp.ne.s32.totalorder %s667_s4, %s560_s10  ;;  %p564_p0 = scmp.lt.u32.totalorder %s560_s10, %s667_s4 }
 0x539   :  { %p566_p1 = pnand %p564_p0, %p561_p13 }
 0x53b   :  { %569 = shalt.err (!%p566_p1)
}
 0x53c   :  { %433 = dma.vmem_to_hbm [thread:$0]  %s431_s7, 128, %s667_s4, [#allocation4]  }
 0x53d   :  { %572 = dma.done.wait [#allocation4], 128  }
 0x53e   :  { %573 = vsyncadd [#allocation4], 4294967168 }
 0x53f   :  { %437 = vsyncpa [#allocation3], 1 }
 0x540   :  { %438 = vsyncpa [#allocation4], 1 }

</bundles_post_ra>
